<compile_context>
chip_gen: v7x
topology: tpu7x:2x2x1
jax: 0.10.0
libtpu: 0.0.40
codegen_flags: <defaults>
</compile_context>

<pallas_src>
import math
from functools import partial

import jax
import jax.numpy as jnp
from jax.experimental import pallas as pl
from jax.experimental.pallas import tpu as pltpu


# ---------------------------------------------------------------------------
# Kernel 1: DistillKL on logits (tiny, gridless, scalar SMEM output)
# ---------------------------------------------------------------------------

def _kd_kernel(os_ref, ot_ref, out_ref, *, alpha, temperature, batch):
    T = temperature
    s = os_ref[...].astype(jnp.float32) * (1.0 / T)
    t = ot_ref[...].astype(jnp.float32) * (1.0 / T)

    def _log_softmax(x):
        m = jnp.max(x, axis=-1, keepdims=True)
        return x - (m + jnp.log(jnp.sum(jnp.exp(x - m), axis=-1, keepdims=True)))

    log_ps = _log_softmax(s)
    log_pt = _log_softmax(t)
    pt = jnp.exp(log_pt)
    # F.kl_div(log_ps, pt, reduction='sum') = sum pt * (log pt - log ps)
    kd = jnp.sum(pt * (log_pt - log_ps)) * (T * T) * (1.0 / batch)
    out_ref[0, 0] = alpha * kd


def _distill_kl(o_s, o_t, *, alpha, temperature):
    batch = o_s.shape[0]
    out = pl.pallas_call(
        partial(_kd_kernel, alpha=float(alpha), temperature=float(temperature),
                batch=float(batch)),
        out_shape=jax.ShapeDtypeStruct((1, 1), jnp.float32),
        in_specs=[pl.BlockSpec(memory_space=pltpu.VMEM)] * 2,
        out_specs=pl.BlockSpec(memory_space=pltpu.SMEM),
    )(o_s, o_t)
    return out[0, 0]


# ---------------------------------------------------------------------------
# Kernel 2: one feature-pyramid level, gridded over (phase, lane tile)
# ---------------------------------------------------------------------------

def _feat_level_kernel(x_ref, w_ref, t_ref, mg_ref, out_ref,
                       shift_ref, mean_ref, istd_ref,
                       acc1_ref, acc2_ref, mse_ref,
                       *, count, scale, eps):
    p = pl.program_id(0)           # 0 = BN-stats pass, 1 = loss pass
    j = pl.program_id(1)           # lane-tile index
    nt = pl.num_programs(1)

    # 1x1 conv on this lane tile: ONE (Cout,Cin)@(Cin,TM) MXU contraction
    # (N folded into the lane axis), f32 accumulation.
    y = jnp.dot(w_ref[...].astype(x_ref.dtype), x_ref[...],
                preferred_element_type=jnp.float32)            # (Cout, TM)

    @pl.when(p == 0)
    def _stats_pass():
        @pl.when(j == 0)
        def _init():
            # shift ~= channel mean (taken from the first tile): shifted sums
            # avoid the E[y^2]-E[y]^2 cancellation of the naive formula.
            shift_ref[...] = jnp.mean(y, axis=-1, keepdims=True)
            acc1_ref[...] = jnp.zeros_like(acc1_ref)
            acc2_ref[...] = jnp.zeros_like(acc2_ref)

        d = y - shift_ref[...]
        acc1_ref[...] += d          # elementwise accumulation on the VPU;
        acc2_ref[...] += d * d      # cross-lane (XLU) reduce only at finalize.

        @pl.when(j == nt - 1)
        def _finalize_stats():
            inv_cnt = 1.0 / count
            s1 = jnp.sum(acc1_ref[...], axis=-1, keepdims=True) * inv_cnt
            s2 = jnp.sum(acc2_ref[...], axis=-1, keepdims=True) * inv_cnt
            mean_ref[...] = shift_ref[...] + s1
            var = jnp.maximum(s2 - s1 * s1, 0.0)   # biased var (BN train mode)
            istd_ref[...] = jax.lax.rsqrt(var + eps)

    @pl.when(p == 1)
    def _loss_pass():
        @pl.when(j == 0)
        def _init():
            mse_ref[...] = jnp.zeros_like(mse_ref)

        y_bn = (y - mean_ref[...]) * istd_ref[...]      # BN weight=1, bias=0
        tgt = jnp.maximum(t_ref[...].astype(jnp.float32), mg_ref[...])
        diff = y_bn - tgt
        keep = jnp.logical_or(y_bn > tgt, tgt > 0.0)
        mse_ref[...] += jnp.where(keep, diff * diff, 0.0)

        @pl.when(j == nt - 1)
        def _finalize_loss():
            lvl = jnp.sum(mse_ref[...]) * scale
            out_ref[...] = jnp.full(out_ref.shape, lvl, jnp.float32)


def _pick_lane_tile(m, target):
    """Largest multiple of 128 that divides m and is <= target (else m)."""
    if m <= target or (m % 128) != 0:
        # TODO(synk): pad/mask a ragged trailing tile instead of falling back
        # to a single full-extent block when m is not a multiple of 128.
        return m
    best = 128
    tm = 128
    while tm <= target:
        if m % tm == 0:
            best = tm
        tm += 128
    return best


def _distill_level(x_cm, w, t_cm, margin, *, scale, lane_tile, vmem_limit_bytes):
    cin, m = x_cm.shape
    cout = w.shape[0]
    tm = _pick_lane_tile(m, lane_tile)
    nt = m // tm

    kernel = partial(_feat_level_kernel,
                     count=float(m), scale=float(scale), eps=1e-5)
    out = pl.pallas_call(
        kernel,
        out_shape=jax.ShapeDtypeStruct((1, 128), jnp.float32),
        grid_spec=pltpu.PrefetchScalarGridSpec(
            num_scalar_prefetch=0,
            grid=(2, nt),                                       # (phase, tile)
            in_specs=[
                pl.BlockSpec((cin, tm), lambda p, j: (0, j)),   # student x
                pl.BlockSpec((cout, cin), lambda p, j: (0, 0)), # conv weight
                # Teacher tile is only consumed in phase 1; pin its index to
                # block 0 during phase 0 so it is not streamed twice.
                pl.BlockSpec((cout, tm), lambda p, j: (0, j * p)),
                pl.BlockSpec((cout, 1), lambda p, j: (0, 0)),   # margin
            ],
            out_specs=pl.BlockSpec((1, 128), lambda p, j: (0, 0)),
            scratch_shapes=[
                pltpu.VMEM((cout, 1), jnp.float32),    # shift
                pltpu.VMEM((cout, 1), jnp.float32),    # mean
                pltpu.VMEM((cout, 1), jnp.float32),    # 1 / std
                pltpu.VMEM((cout, tm), jnp.float32),   # sum(y - shift)
                pltpu.VMEM((cout, tm), jnp.float32),   # sum((y - shift)^2)
                pltpu.VMEM((cout, tm), jnp.float32),   # masked-MSE partial
            ]),
        compiler_params=pltpu.CompilerParams(
            # Both axes are sequential reductions (phase 1 depends on the BN
            # stats finalized at the end of phase 0).
            # NOTE (v7x dual-TC): to use both TensorCores, add a leading
            # "parallel" axis over disjoint lane ranges with per-core partial
            # stats / MSE combined in a final step.
            dimension_semantics=("arbitrary", "arbitrary"),
            vmem_limit_bytes=vmem_limit_bytes),
    )(x_cm, w, t_cm, margin)
    return out[0, 0]


# ---------------------------------------------------------------------------
# Wrapper: full OD.forward
# ---------------------------------------------------------------------------

def od_forward(o_s, o_t, g_s, g_t, conv_weights, margins, *,
               alpha, beta, temperature,
               feature_dtype=jnp.bfloat16, lane_tile=1024,
               vmem_limit_bytes=32 * 1024 * 1024):
    """Full OD.forward.

    o_s / o_t       : (B, num_classes) logits
    g_s[i]          : (N, Cin_i,  H_i, W_i) student features (NCHW)
    g_t[i]          : (N, Cout_i, H_i, W_i) teacher features (NCHW)
    conv_weights[i] : (Cout_i, Cin_i) 1x1-conv weight (BN affine = identity,
                      matching conv1x1() init: weight=1, bias=0)
    margins[i]      : (Cout_i,) margin buffer

    feature_dtype=bf16 halves HBM traffic of the dominant feature streams
    (compute stays f32); pass None to keep the input dtype (exact f32 path).
    """
    o_t = jax.lax.stop_gradient(o_t)
    g_t = [jax.lax.stop_gradient(f) for f in g_t]
    feat_num = len(g_s)

    total = _distill_kl(o_s, o_t, alpha=alpha, temperature=temperature)

    for i, (f_s, f_t, w, mg) in enumerate(zip(g_s, g_t, conv_weights, margins)):
        n, cin, h, wd = f_s.shape
        cout = f_t.shape[1]
        m = n * h * wd
        dt = f_s.dtype if feature_dtype is None else feature_dtype
        # Fold N into the lane axis: (N,C,H,W) -> (C, N*H*W).  Keeps the lane
        # axis dense even for deep levels with H*W < 128 and removes every
        # per-sample loop from the kernel; the transpose fuses with the
        # (optional) bf16 cast into one cheap XLA pass over the feature.
        x_cm = jnp.transpose(f_s.reshape(n, cin, h * wd), (1, 0, 2)
                             ).reshape(cin, m).astype(dt)
        t_cm = jnp.transpose(f_t.reshape(n, cout, h * wd), (1, 0, 2)
                             ).reshape(cout, m).astype(dt)
        # PyTorch divides the feature loss by the *feature* batch size.
        scale = float(beta) / float(2 ** (feat_num - i - 1)) / float(n)
        total = total + _distill_level(
            x_cm, w.astype(jnp.float32), t_cm,
            mg.reshape(cout, 1).astype(jnp.float32),
            scale=scale, lane_tile=lane_tile,
            vmem_limit_bytes=vmem_limit_bytes)
    return total


# ---------------------------------------------------------------------------
# Pure-JAX reference (mirrors the PyTorch module) — used for self-check only
# ---------------------------------------------------------------------------

def od_reference(o_s, o_t, g_s, g_t, conv_weights, margins, *,
                 alpha, beta, temperature):
    T = temperature
    log_ps = jax.nn.log_softmax(o_s / T, axis=-1)
    log_pt = jax.nn.log_softmax(o_t / T, axis=-1)
    pt = jnp.exp(log_pt)
    loss = alpha * jnp.sum(pt * (log_pt - log_ps)) * (T * T) / o_s.shape[0]
    feat_num = len(g_s)
    for i, (f_s, f_t, w, mg) in enumerate(zip(g_s, g_t, conv_weights, margins)):
        n = f_s.shape[0]
        cout = f_t.shape[1]
        y = jnp.einsum('oc,nchw->nohw', w, f_s,
                       precision=jax.lax.Precision.HIGHEST)
        mean = jnp.mean(y, axis=(0, 2, 3), keepdims=True)
        var = jnp.mean((y - mean) ** 2, axis=(0, 2, 3), keepdims=True)
        y_bn = (y - mean) * jax.lax.rsqrt(var + 1e-5)
        tgt = jnp.maximum(f_t, mg.reshape(1, cout, 1, 1))
        keep = (y_bn > tgt) | (tgt > 0)
        lvl = jnp.sum(jnp.where(keep, (y_bn - tgt) ** 2, 0.0)) / n
        loss = loss + beta * lvl / (2 ** (feat_num - i - 1))
    return loss


# ---------------------------------------------------------------------------
# Deterministic parameter construction (synthetic; mirrors OD.__init__)
# ---------------------------------------------------------------------------

def get_margin_from_bn(bn_weight, bn_bias):
    """Port of OD.get_margin_from_BN (Gaussian cdf via erf, host-side)."""
    margin = []
    for s, m in zip(bn_weight.tolist(), bn_bias.tolist()):
        s = abs(float(s))
        m = float(m)
        cdf = 0.5 * (1.0 + math.erf((-m / s) / math.sqrt(2.0)))
        if cdf > 0.001:
            margin.append(
                -s * math.exp(-(m / s) ** 2 / 2) / math.sqrt(2 * math.pi) / cdf + m)
        else:
            margin.append(-3.0 * s)
    return jnp.array(margin, dtype=jnp.float32)


def _rel_err(a, b):
    return abs(float(a) - float(b)) / max(abs(float(b)), 1e-6)


if __name__ == "__main__":
    key = jax.random.PRNGKey(0)

    # args-equivalent hyperparameters
    alpha, beta, temperature = 0.9, 200.0, 4.0
    network_channels = [4, 8]     # student feature channels per level
    net_channels = [8, 8]         # bifpn / teacher channels per level
    spatial = [16, 8]             # H = W per pyramid level
    batch, num_classes = 2, 10

    keys = iter(jax.random.split(key, 4 + 5 * len(network_channels)))

    o_s = jax.random.normal(next(keys), (batch, num_classes), jnp.float32)
    o_t = jax.random.normal(next(keys), (batch, num_classes), jnp.float32)

    g_s, g_t, conv_weights, margins = [], [], [], []
    for cin, cout, hw in zip(network_channels, net_channels, spatial):
        g_s.append(jax.random.normal(next(keys), (batch, cin, hw, hw), jnp.float32))
        g_t.append(jax.random.normal(next(keys), (batch, cout, hw, hw), jnp.float32))
        # conv1x1 init: normal(0, sqrt(2 / (1*1*out_channels)))
        w = jax.random.normal(next(keys), (cout, cin), jnp.float32) * math.sqrt(2.0 / cout)
        conv_weights.append(w)
        # synthetic (deterministic) teacher-BN params -> margin buffer
        bn_w = 1.0 + 0.1 * jax.random.normal(next(keys), (cout,), jnp.float32)
        bn_b = 0.1 * jax.random.normal(next(keys), (cout,), jnp.float32)
        margins.append(get_margin_from_bn(bn_w, bn_b))

    # lane_tile=256 so level 0 (M = 2*16*16 = 512) exercises the multi-tile
    # pipelined grid path; level 1 (M = 2*8*8 = 128) runs the single-tile path.
    run_bf16 = jax.jit(lambda *a: od_forward(
        *a, alpha=alpha, beta=beta, temperature=temperature,
        feature_dtype=jnp.bfloat16, lane_tile=256))
    run_f32 = jax.jit(lambda *a: od_forward(
        *a, alpha=alpha, beta=beta, temperature=temperature,
        feature_dtype=None, lane_tile=256))
    ref_fn = jax.jit(partial(od_reference, alpha=alpha, beta=beta,
                             temperature=temperature))

    args = (o_s, o_t, g_s, g_t, conv_weights, margins)
    loss_bf16 = jax.block_until_ready(run_bf16(*args))
    loss_f32 = jax.block_until_ready(run_f32(*args))
    ref = jax.block_until_ready(ref_fn(*args))

    assert bool(jnp.isfinite(loss_bf16)) and bool(jnp.isfinite(loss_f32))
    assert _rel_err(loss_f32, ref) < 5e-3, (float(loss_f32), float(ref))
    assert _rel_err(loss_bf16, ref) < 1.5e-1, (float(loss_bf16), float(ref))
    print("KERNEL_OK")
</pallas_src>

<mosaic_0001>
module attributes {stable_mosaic.version = 11 : i64} {
  func.func @_feat_level_kernel(%arg0: i32, %arg1: i32, %arg2: memref<8x128xbf16, #tpu.memory_space<vmem>>, %arg3: memref<8x8xf32, #tpu.memory_space<vmem>>, %arg4: memref<8x128xbf16, #tpu.memory_space<vmem>>, %arg5: memref<8x1xf32, #tpu.memory_space<vmem>>, %arg6: memref<1x128xf32, #tpu.memory_space<vmem>>, %arg7: memref<8x1xf32, #tpu.memory_space<vmem>>, %arg8: memref<8x1xf32, #tpu.memory_space<vmem>>, %arg9: memref<8x1xf32, #tpu.memory_space<vmem>>, %arg10: memref<8x128xf32, #tpu.memory_space<vmem>>, %arg11: memref<8x128xf32, #tpu.memory_space<vmem>>, %arg12: memref<8x128xf32, #tpu.memory_space<vmem>>) attributes {dimension_semantics = [#tpu.dimension_semantics<arbitrary>, #tpu.dimension_semantics<arbitrary>], iteration_bounds = array<i64: 2, 1>, scalar_prefetch = 0 : i64, scratch_operands = 6 : i64, tpu.core_type = #tpu.core_type<tc>, window_params = [{transform_indices = @transform_0, window_bounds = array<i64: 8, 128>}, {pipeline_mode = #tpu.pipeline_mode<synchronous>, transform_indices = @transform_1, window_bounds = array<i64: 8, 8>}, {transform_indices = @transform_2, window_bounds = array<i64: 8, 128>}, {pipeline_mode = #tpu.pipeline_mode<synchronous>, transform_indices = @transform_3, window_bounds = array<i64: 8, 1>}, {pipeline_mode = #tpu.pipeline_mode<synchronous>, transform_indices = @transform_4, window_bounds = array<i64: 1, 128>}]} {
    %c0 = arith.constant 0 : index
    %c0_0 = arith.constant 0 : index
    %0 = vector.load %arg3[%c0, %c0_0] : memref<8x8xf32, #tpu.memory_space<vmem>>, vector<8x8xf32>
    %1 = arith.truncf %0 : vector<8x8xf32> to vector<8x8xbf16>
    %c0_1 = arith.constant 0 : index
    %c0_2 = arith.constant 0 : index
    %2 = vector.load %arg2[%c0_1, %c0_2] : memref<8x128xbf16, #tpu.memory_space<vmem>>, vector<8x128xbf16>
    %cst = arith.constant dense<0.000000e+00> : vector<8x128xf32>
    %3 = tpu.matmul %1, %2, %cst {dimension_numbers = #tpu.dot_dimension_numbers<[1], [0], [0], [1], [0, 0, 1, 1], [], []>} : vector<8x8xbf16>, vector<8x128xbf16>, vector<8x128xf32> -> vector<8x128xf32>
    %c0_i32 = arith.constant 0 : i32
    %4 = arith.cmpi eq, %arg0, %c0_i32 : i32
    %5 = arith.extui %4 : i1 to i32
    %c0_i32_3 = arith.constant 0 : i32
    %6 = arith.cmpi ne, %5, %c0_i32_3 : i32
    scf.if %6 {
      %c0_i32_5 = arith.constant 0 : i32
      %10 = arith.cmpi eq, %arg1, %c0_i32_5 : i32
      %11 = arith.extui %10 : i1 to i32
      %c0_i32_6 = arith.constant 0 : i32
      %12 = arith.cmpi ne, %11, %c0_i32_6 : i32
      scf.if %12 {
        %cst_19 = arith.constant dense<0.000000e+00> : vector<8xf32>
        %26 = vector.multi_reduction <add>, %3, %cst_19 [1] : vector<8x128xf32> to vector<8xf32>
        %27 = vector.shape_cast %26 : vector<8xf32> to vector<8x1xf32>
        %cst_20 = arith.constant 1.280000e+02 : f32
        %28 = vector.broadcast %cst_20 : f32 to vector<8x1xf32>
        %29 = arith.divf %27, %28 : vector<8x1xf32>
        %c0_21 = arith.constant 0 : index
        %c0_22 = arith.constant 0 : index
        %30 = vector.load %arg7[%c0_21, %c0_22] : memref<8x1xf32, #tpu.memory_space<vmem>>, vector<8x1xf32>
        tpu.vector_store %arg7[%c0_21, %c0_22], %29 {strides = array<i32>} : memref<8x1xf32, #tpu.memory_space<vmem>>, vector<8x1xf32>,
        %cst_23 = arith.constant 0.000000e+00 : f32
        %31 = vector.broadcast %cst_23 : f32 to vector<8x128xf32>
        %c0_24 = arith.constant 0 : index
        %c0_25 = arith.constant 0 : index
        %32 = vector.load %arg10[%c0_24, %c0_25] : memref<8x128xf32, #tpu.memory_space<vmem>>, vector<8x128xf32>
        tpu.vector_store %arg10[%c0_24, %c0_25], %31 {strides = array<i32>} : memref<8x128xf32, #tpu.memory_space<vmem>>, vector<8x128xf32>,
        %cst_26 = arith.constant 0.000000e+00 : f32
        %33 = vector.broadcast %cst_26 : f32 to vector<8x128xf32>
        %c0_27 = arith.constant 0 : index
        %c0_28 = arith.constant 0 : index
        %34 = vector.load %arg11[%c0_27, %c0_28] : memref<8x128xf32, #tpu.memory_space<vmem>>, vector<8x128xf32>
        tpu.vector_store %arg11[%c0_27, %c0_28], %33 {strides = array<i32>} : memref<8x128xf32, #tpu.memory_space<vmem>>, vector<8x128xf32>,
      } else {
      }
      %c0_7 = arith.constant 0 : index
      %c0_8 = arith.constant 0 : index
      %13 = vector.load %arg7[%c0_7, %c0_8] : memref<8x1xf32, #tpu.memory_space<vmem>>, vector<8x1xf32>
      %14 = vector.broadcast %13 : vector<8x1xf32> to vector<8x128xf32>
      %15 = arith.subf %3, %14 : vector<8x128xf32>
      %c0_9 = arith.constant 0 : index
      %c0_10 = arith.constant 0 : index
      %16 = vector.load %arg10[%c0_9, %c0_10] : memref<8x128xf32, #tpu.memory_space<vmem>>, vector<8x128xf32>
      %17 = arith.addf %16, %15 : vector<8x128xf32>
      %c0_11 = arith.constant 0 : index
      %c0_12 = arith.constant 0 : index
      %18 = vector.load %arg10[%c0_11, %c0_12] : memref<8x128xf32, #tpu.memory_space<vmem>>, vector<8x128xf32>
      tpu.vector_store %arg10[%c0_11, %c0_12], %17 {strides = array<i32>} : memref<8x128xf32, #tpu.memory_space<vmem>>, vector<8x128xf32>,
      %c0_13 = arith.constant 0 : index
      %c0_14 = arith.constant 0 : index
      %19 = vector.load %arg11[%c0_13, %c0_14] : memref<8x128xf32, #tpu.memory_space<vmem>>, vector<8x128xf32>
      %20 = arith.mulf %15, %15 : vector<8x128xf32>
      %21 = arith.addf %19, %20 : vector<8x128xf32>
      %c0_15 = arith.constant 0 : index
      %c0_16 = arith.constant 0 : index
      %22 = vector.load %arg11[%c0_15, %c0_16] : memref<8x128xf32, #tpu.memory_space<vmem>>, vector<8x128xf32>
      tpu.vector_store %arg11[%c0_15, %c0_16], %21 {strides = array<i32>} : memref<8x128xf32, #tpu.memory_space<vmem>>, vector<8x128xf32>,
      %c0_i32_17 = arith.constant 0 : i32
      %23 = arith.cmpi eq, %arg1, %c0_i32_17 : i32
      %24 = arith.extui %23 : i1 to i32
      %c0_i32_18 = arith.constant 0 : i32
      %25 = arith.cmpi ne, %24, %c0_i32_18 : i32
      scf.if %25 {
        %c0_19 = arith.constant 0 : index
        %c0_20 = arith.constant 0 : index
        %26 = vector.load %arg10[%c0_19, %c0_20] : memref<8x128xf32, #tpu.memory_space<vmem>>, vector<8x128xf32>
        %cst_21 = arith.constant dense<0.000000e+00> : vector<8xf32>
        %27 = vector.multi_reduction <add>, %26, %cst_21 [1] : vector<8x128xf32> to vector<8xf32>
        %28 = vector.shape_cast %27 : vector<8xf32> to vector<8x1xf32>
        %cst_22 = arith.constant 7.812500e-03 : f32
        %29 = vector.broadcast %cst_22 : f32 to vector<8x1xf32>
        %30 = arith.mulf %28, %29 : vector<8x1xf32>
        %c0_23 = arith.constant 0 : index
        %c0_24 = arith.constant 0 : index
        %31 = vector.load %arg11[%c0_23, %c0_24] : memref<8x128xf32, #tpu.memory_space<vmem>>, vector<8x128xf32>
        %cst_25 = arith.constant dense<0.000000e+00> : vector<8xf32>
        %32 = vector.multi_reduction <add>, %31, %cst_25 [1] : vector<8x128xf32> to vector<8xf32>
        %33 = vector.shape_cast %32 : vector<8xf32> to vector<8x1xf32>
        %cst_26 = arith.constant 7.812500e-03 : f32
        %34 = vector.broadcast %cst_26 : f32 to vector<8x1xf32>
        %35 = arith.mulf %33, %34 : vector<8x1xf32>
        %c0_27 = arith.constant 0 : index
        %c0_28 = arith.constant 0 : index
        %36 = vector.load %arg7[%c0_27, %c0_28] : memref<8x1xf32, #tpu.memory_space<vmem>>, vector<8x1xf32>
        %37 = arith.addf %36, %30 : vector<8x1xf32>
        %c0_29 = arith.constant 0 : index
        %c0_30 = arith.constant 0 : index
        %38 = vector.load %arg8[%c0_29, %c0_30] : memref<8x1xf32, #tpu.memory_space<vmem>>, vector<8x1xf32>
        tpu.vector_store %arg8[%c0_29, %c0_30], %37 {strides = array<i32>} : memref<8x1xf32, #tpu.memory_space<vmem>>, vector<8x1xf32>,
        %39 = arith.mulf %30, %30 : vector<8x1xf32>
        %40 = arith.subf %35, %39 : vector<8x1xf32>
        %cst_31 = arith.constant 0.000000e+00 : f32
        %41 = vector.broadcast %cst_31 : f32 to vector<8x1xf32>
        %42 = arith.maximumf %40, %41 : vector<8x1xf32>
        %cst_32 = arith.constant 9.99999974E-6 : f32
        %43 = vector.broadcast %cst_32 : f32 to vector<8x1xf32>
        %44 = arith.addf %42, %43 : vector<8x1xf32>
        %45 = math.rsqrt %44 : vector<8x1xf32>
        %c0_33 = arith.constant 0 : index
        %c0_34 = arith.constant 0 : index
        %46 = vector.load %arg9[%c0_33, %c0_34] : memref<8x1xf32, #tpu.memory_space<vmem>>, vector<8x1xf32>
        tpu.vector_store %arg9[%c0_33, %c0_34], %45 {strides = array<i32>} : memref<8x1xf32, #tpu.memory_space<vmem>>, vector<8x1xf32>,
      } else {
      }
    } else {
    }
    %c1_i32 = arith.constant 1 : i32
    %7 = arith.cmpi eq, %arg0, %c1_i32 : i32
    %8 = arith.extui %7 : i1 to i32
    %c0_i32_4 = arith.constant 0 : i32
    %9 = arith.cmpi ne, %8, %c0_i32_4 : i32
    scf.if %9 {
      %c0_i32_5 = arith.constant 0 : i32
      %10 = arith.cmpi eq, %arg1, %c0_i32_5 : i32
      %11 = arith.extui %10 : i1 to i32
      %c0_i32_6 = arith.constant 0 : i32
      %12 = arith.cmpi ne, %11, %c0_i32_6 : i32
      scf.if %12 {
        %cst_23 = arith.constant 0.000000e+00 : f32
        %38 = vector.broadcast %cst_23 : f32 to vector<8x128xf32>
        %c0_24 = arith.constant 0 : index
        %c0_25 = arith.constant 0 : index
        %39 = vector.load %arg12[%c0_24, %c0_25] : memref<8x128xf32, #tpu.memory_space<vmem>>, vector<8x128xf32>
        tpu.vector_store %arg12[%c0_24, %c0_25], %38 {strides = array<i32>} : memref<8x128xf32, #tpu.memory_space<vmem>>, vector<8x128xf32>,
      } else {
      }
      %c0_7 = arith.constant 0 : index
      %c0_8 = arith.constant 0 : index
      %13 = vector.load %arg8[%c0_7, %c0_8] : memref<8x1xf32, #tpu.memory_space<vmem>>, vector<8x1xf32>
      %14 = vector.broadcast %13 : vector<8x1xf32> to vector<8x128xf32>
      %15 = arith.subf %3, %14 : vector<8x128xf32>
      %c0_9 = arith.constant 0 : index
      %c0_10 = arith.constant 0 : index
      %16 = vector.load %arg9[%c0_9, %c0_10] : memref<8x1xf32, #tpu.memory_space<vmem>>, vector<8x1xf32>
      %17 = vector.broadcast %16 : vector<8x1xf32> to vector<8x128xf32>
      %18 = arith.mulf %15, %17 : vector<8x128xf32>
      %c0_11 = arith.constant 0 : index
      %c0_12 = arith.constant 0 : index
      %19 = vector.load %arg4[%c0_11, %c0_12] : memref<8x128xbf16, #tpu.memory_space<vmem>>, vector<8x128xbf16>
      %20 = arith.extf %19 : vector<8x128xbf16> to vector<8x128xf32>
      %c0_13 = arith.constant 0 : index
      %c0_14 = arith.constant 0 : index
      %21 = vector.load %arg5[%c0_13, %c0_14] : memref<8x1xf32, #tpu.memory_space<vmem>>, vector<8x1xf32>
      %22 = vector.broadcast %21 : vector<8x1xf32> to vector<8x128xf32>
      %23 = arith.maximumf %20, %22 : vector<8x128xf32>
      %24 = arith.subf %18, %23 : vector<8x128xf32>
      %25 = arith.cmpf ogt, %18, %23 : vector<8x128xf32>
      %cst_15 = arith.constant 0.000000e+00 : f32
      %26 = vector.broadcast %cst_15 : f32 to vector<8x128xf32>
      %27 = arith.cmpf ogt, %23, %26 : vector<8x128xf32>
      %28 = arith.ori %25, %27 : vector<8x128xi1>
      %c0_16 = arith.constant 0 : index
      %c0_17 = arith.constant 0 : index
      %29 = vector.load %arg12[%c0_16, %c0_17] : memref<8x128xf32, #tpu.memory_space<vmem>>, vector<8x128xf32>
      %30 = arith.mulf %24, %24 : vector<8x128xf32>
      %cst_18 = arith.constant 0.000000e+00 : f32
      %31 = vector.broadcast %cst_18 : f32 to vector<8x128xf32>
      %32 = arith.select %28, %30, %31 : vector<8x128xi1>, vector<8x128xf32>
      %33 = arith.addf %29, %32 : vector<8x128xf32>
      %c0_19 = arith.constant 0 : index
      %c0_20 = arith.constant 0 : index
      %34 = vector.load %arg12[%c0_19, %c0_20] : memref<8x128xf32, #tpu.memory_space<vmem>>, vector<8x128xf32>
      tpu.vector_store %arg12[%c0_19, %c0_20], %33 {strides = array<i32>} : memref<8x128xf32, #tpu.memory_space<vmem>>, vector<8x128xf32>,
      %c0_i32_21 = arith.constant 0 : i32
      %35 = arith.cmpi eq, %arg1, %c0_i32_21 : i32
      %36 = arith.extui %35 : i1 to i32
      %c0_i32_22 = arith.constant 0 : i32
      %37 = arith.cmpi ne, %36, %c0_i32_22 : i32
      scf.if %37 {
        %c0_23 = arith.constant 0 : index
        %c0_24 = arith.constant 0 : index
        %38 = vector.load %arg12[%c0_23, %c0_24] : memref<8x128xf32, #tpu.memory_space<vmem>>, vector<8x128xf32>
        %39 = vector.shape_cast %38 : vector<8x128xf32> to vector<1x8x128xf32>
        %cst_25 = arith.constant dense<0.000000e+00> : vector<1xf32>
        %40 = vector.multi_reduction <add>, %39, %cst_25 [1, 2] : vector<1x8x128xf32> to vector<1xf32>
        %41 = vector.shape_cast %40 : vector<1xf32> to vector<1x1x1xf32>
        %42 = vector.extract %41[0, 0, 0] : f32 from vector<1x1x1xf32>
        %cst_26 = arith.constant 1.000000e+02 : f32
        %43 = arith.mulf %42, %cst_26 : f32
        %44 = vector.broadcast %43 : f32 to vector<1x128xf32>
        %c0_27 = arith.constant 0 : index
        %c0_28 = arith.constant 0 : index
        %45 = vector.load %arg6[%c0_27, %c0_28] : memref<1x128xf32, #tpu.memory_space<vmem>>, vector<1x128xf32>
        tpu.vector_store %arg6[%c0_27, %c0_28], %44 {strides = array<i32>} : memref<1x128xf32, #tpu.memory_space<vmem>>, vector<1x128xf32>,
      } else {
      }
    } else {
    }
    return
  }
  func.func @transform_0(%arg0: i32, %arg1: i32) -> (i32, i32) {
    %c0_i32 = arith.constant 0 : i32
    %c0_i32_0 = arith.constant 0 : i32
    return %c0_i32, %arg1 : i32, i32
  }
  func.func @transform_1(%arg0: i32, %arg1: i32) -> (i32, i32) {
    %c0_i32 = arith.constant 0 : i32
    %c0_i32_0 = arith.constant 0 : i32
    %c0_i32_1 = arith.constant 0 : i32
    return %c0_i32, %c0_i32_0 : i32, i32
  }
  func.func @transform_2(%arg0: i32, %arg1: i32) -> (i32, i32) {
    %0 = arith.muli %arg1, %arg0 : i32
    %c0_i32 = arith.constant 0 : i32
    %c0_i32_0 = arith.constant 0 : i32
    return %c0_i32, %0 : i32, i32
  }
  func.func @transform_3(%arg0: i32, %arg1: i32) -> (i32, i32) {
    %c0_i32 = arith.constant 0 : i32
    %c0_i32_0 = arith.constant 0 : i32
    %c0_i32_1 = arith.constant 0 : i32
    return %c0_i32, %c0_i32_0 : i32, i32
  }
  func.func @transform_4(%arg0: i32, %arg1: i32) -> (i32, i32) {
    %c0_i32 = arith.constant 0 : i32
    %c0_i32_0 = arith.constant 0 : i32
    %c0_i32_1 = arith.constant 0 : i32
    return %c0_i32, %c0_i32_0 : i32, i32
  }
}

module attributes {stable_mosaic.version = 11 : i64} {
  func.func @_kd_kernel(%arg0: memref<2x10xf32, #tpu.memory_space<vmem>>, %arg1: memref<2x10xf32, #tpu.memory_space<vmem>>, %arg2: memref<1x1xf32, #tpu.memory_space<smem>>) attributes {dimension_semantics = [], scalar_prefetch = 0 : i64, scratch_operands = 0 : i64, tpu.core_type = #tpu.core_type<tc>} {
    %c0 = arith.constant 0 : index
    %c0_0 = arith.constant 0 : index
    %0 = vector.load %arg0[%c0, %c0_0] : memref<2x10xf32, #tpu.memory_space<vmem>>, vector<2x10xf32>
    %cst = arith.constant 2.500000e-01 : f32
    %1 = vector.broadcast %cst : f32 to vector<2x10xf32>
    %2 = arith.mulf %0, %1 : vector<2x10xf32>
    %c0_1 = arith.constant 0 : index
    %c0_2 = arith.constant 0 : index
    %3 = vector.load %arg1[%c0_1, %c0_2] : memref<2x10xf32, #tpu.memory_space<vmem>>, vector<2x10xf32>
    %cst_3 = arith.constant 2.500000e-01 : f32
    %4 = vector.broadcast %cst_3 : f32 to vector<2x10xf32>
    %5 = arith.mulf %3, %4 : vector<2x10xf32>
    %cst_4 = arith.constant dense<0xFF800000> : vector<2xf32>
    %6 = vector.multi_reduction <maximumf>, %2, %cst_4 [1] : vector<2x10xf32> to vector<2xf32>
    %7 = vector.shape_cast %6 : vector<2xf32> to vector<2x1xf32>
    %8 = vector.broadcast %7 : vector<2x1xf32> to vector<2x10xf32>
    %9 = arith.subf %2, %8 : vector<2x10xf32>
    %10 = math.exp %9 : vector<2x10xf32>
    %cst_5 = arith.constant dense<0.000000e+00> : vector<2xf32>
    %11 = vector.multi_reduction <add>, %10, %cst_5 [1] : vector<2x10xf32> to vector<2xf32>
    %12 = vector.shape_cast %11 : vector<2xf32> to vector<2x1xf32>
    %13 = math.log %12 : vector<2x1xf32>
    %14 = arith.addf %7, %13 : vector<2x1xf32>
    %15 = vector.broadcast %14 : vector<2x1xf32> to vector<2x10xf32>
    %16 = arith.subf %2, %15 : vector<2x10xf32>
    %cst_6 = arith.constant dense<0xFF800000> : vector<2xf32>
    %17 = vector.multi_reduction <maximumf>, %5, %cst_6 [1] : vector<2x10xf32> to vector<2xf32>
    %18 = vector.shape_cast %17 : vector<2xf32> to vector<2x1xf32>
    %19 = vector.broadcast %18 : vector<2x1xf32> to vector<2x10xf32>
    %20 = arith.subf %5, %19 : vector<2x10xf32>
    %21 = math.exp %20 : vector<2x10xf32>
    %cst_7 = arith.constant dense<0.000000e+00> : vector<2xf32>
    %22 = vector.multi_reduction <add>, %21, %cst_7 [1] : vector<2x10xf32> to vector<2xf32>
    %23 = vector.shape_cast %22 : vector<2xf32> to vector<2x1xf32>
    %24 = math.log %23 : vector<2x1xf32>
    %25 = arith.addf %18, %24 : vector<2x1xf32>
    %26 = vector.broadcast %25 : vector<2x1xf32> to vector<2x10xf32>
    %27 = arith.subf %5, %26 : vector<2x10xf32>
    %28 = math.exp %27 : vector<2x10xf32>
    %29 = arith.subf %27, %16 : vector<2x10xf32>
    %30 = arith.mulf %28, %29 : vector<2x10xf32>
    %31 = vector.shape_cast %30 : vector<2x10xf32> to vector<1x2x10xf32>
    %cst_8 = arith.constant dense<0.000000e+00> : vector<1xf32>
    %32 = vector.multi_reduction <add>, %31, %cst_8 [1, 2] : vector<1x2x10xf32> to vector<1xf32>
    %33 = vector.shape_cast %32 : vector<1xf32> to vector<1x1x1xf32>
    %34 = vector.extract %33[0, 0, 0] : f32 from vector<1x1x1xf32>
    %cst_9 = arith.constant 1.600000e+01 : f32
    %35 = arith.mulf %34, %cst_9 : f32
    %cst_10 = arith.constant 5.000000e-01 : f32
    %36 = arith.mulf %35, %cst_10 : f32
    %cst_11 = arith.constant 0.899999976 : f32
    %37 = arith.mulf %cst_11, %36 : f32
    %c0_12 = arith.constant 0 : index
    %c0_13 = arith.constant 0 : index
    %38 = memref.load %arg2[%c0_12, %c0_13] : memref<1x1xf32, #tpu.memory_space<smem>>
    memref.store %37, %arg2[%c0_12, %c0_13] : memref<1x1xf32, #tpu.memory_space<smem>>
    return
  }
}

module attributes {stable_mosaic.version = 11 : i64} {
  func.func @_feat_level_kernel(%arg0: i32, %arg1: i32, %arg2: memref<4x256xbf16, #tpu.memory_space<vmem>>, %arg3: memref<8x4xf32, #tpu.memory_space<vmem>>, %arg4: memref<8x256xbf16, #tpu.memory_space<vmem>>, %arg5: memref<8x1xf32, #tpu.memory_space<vmem>>, %arg6: memref<1x128xf32, #tpu.memory_space<vmem>>, %arg7: memref<8x1xf32, #tpu.memory_space<vmem>>, %arg8: memref<8x1xf32, #tpu.memory_space<vmem>>, %arg9: memref<8x1xf32, #tpu.memory_space<vmem>>, %arg10: memref<8x256xf32, #tpu.memory_space<vmem>>, %arg11: memref<8x256xf32, #tpu.memory_space<vmem>>, %arg12: memref<8x256xf32, #tpu.memory_space<vmem>>) attributes {dimension_semantics = [#tpu.dimension_semantics<arbitrary>, #tpu.dimension_semantics<arbitrary>], iteration_bounds = array<i64: 2, 2>, scalar_prefetch = 0 : i64, scratch_operands = 6 : i64, tpu.core_type = #tpu.core_type<tc>, window_params = [{transform_indices = @transform_0, window_bounds = array<i64: 4, 256>}, {pipeline_mode = #tpu.pipeline_mode<synchronous>, transform_indices = @transform_1, window_bounds = array<i64: 8, 4>}, {transform_indices = @transform_2, window_bounds = array<i64: 8, 256>}, {pipeline_mode = #tpu.pipeline_mode<synchronous>, transform_indices = @transform_3, window_bounds = array<i64: 8, 1>}, {pipeline_mode = #tpu.pipeline_mode<synchronous>, transform_indices = @transform_4, window_bounds = array<i64: 1, 128>}]} {
    %c0 = arith.constant 0 : index
    %c0_0 = arith.constant 0 : index
    %0 = vector.load %arg3[%c0, %c0_0] : memref<8x4xf32, #tpu.memory_space<vmem>>, vector<8x4xf32>
    %1 = arith.truncf %0 : vector<8x4xf32> to vector<8x4xbf16>
    %c0_1 = arith.constant 0 : index
    %c0_2 = arith.constant 0 : index
    %2 = vector.load %arg2[%c0_1, %c0_2] : memref<4x256xbf16, #tpu.memory_space<vmem>>, vector<4x256xbf16>
    %cst = arith.constant dense<0.000000e+00> : vector<8x256xf32>
    %3 = tpu.matmul %1, %2, %cst {dimension_numbers = #tpu.dot_dimension_numbers<[1], [0], [0], [1], [0, 0, 1, 1], [], []>} : vector<8x4xbf16>, vector<4x256xbf16>, vector<8x256xf32> -> vector<8x256xf32>
    %c0_i32 = arith.constant 0 : i32
    %4 = arith.cmpi eq, %arg0, %c0_i32 : i32
    %5 = arith.extui %4 : i1 to i32
    %c0_i32_3 = arith.constant 0 : i32
    %6 = arith.cmpi ne, %5, %c0_i32_3 : i32
    scf.if %6 {
      %c0_i32_5 = arith.constant 0 : i32
      %10 = arith.cmpi eq, %arg1, %c0_i32_5 : i32
      %11 = arith.extui %10 : i1 to i32
      %c0_i32_6 = arith.constant 0 : i32
      %12 = arith.cmpi ne, %11, %c0_i32_6 : i32
      scf.if %12 {
        %cst_19 = arith.constant dense<0.000000e+00> : vector<8xf32>
        %26 = vector.multi_reduction <add>, %3, %cst_19 [1] : vector<8x256xf32> to vector<8xf32>
        %27 = vector.shape_cast %26 : vector<8xf32> to vector<8x1xf32>
        %cst_20 = arith.constant 2.560000e+02 : f32
        %28 = vector.broadcast %cst_20 : f32 to vector<8x1xf32>
        %29 = arith.divf %27, %28 : vector<8x1xf32>
        %c0_21 = arith.constant 0 : index
        %c0_22 = arith.constant 0 : index
        %30 = vector.load %arg7[%c0_21, %c0_22] : memref<8x1xf32, #tpu.memory_space<vmem>>, vector<8x1xf32>
        tpu.vector_store %arg7[%c0_21, %c0_22], %29 {strides = array<i32>} : memref<8x1xf32, #tpu.memory_space<vmem>>, vector<8x1xf32>,
        %cst_23 = arith.constant 0.000000e+00 : f32
        %31 = vector.broadcast %cst_23 : f32 to vector<8x256xf32>
        %c0_24 = arith.constant 0 : index
        %c0_25 = arith.constant 0 : index
        %32 = vector.load %arg10[%c0_24, %c0_25] : memref<8x256xf32, #tpu.memory_space<vmem>>, vector<8x256xf32>
        tpu.vector_store %arg10[%c0_24, %c0_25], %31 {strides = array<i32>} : memref<8x256xf32, #tpu.memory_space<vmem>>, vector<8x256xf32>,
        %cst_26 = arith.constant 0.000000e+00 : f32
        %33 = vector.broadcast %cst_26 : f32 to vector<8x256xf32>
        %c0_27 = arith.constant 0 : index
        %c0_28 = arith.constant 0 : index
        %34 = vector.load %arg11[%c0_27, %c0_28] : memref<8x256xf32, #tpu.memory_space<vmem>>, vector<8x256xf32>
        tpu.vector_store %arg11[%c0_27, %c0_28], %33 {strides = array<i32>} : memref<8x256xf32, #tpu.memory_space<vmem>>, vector<8x256xf32>,
      } else {
      }
      %c0_7 = arith.constant 0 : index
      %c0_8 = arith.constant 0 : index
      %13 = vector.load %arg7[%c0_7, %c0_8] : memref<8x1xf32, #tpu.memory_space<vmem>>, vector<8x1xf32>
      %14 = vector.broadcast %13 : vector<8x1xf32> to vector<8x256xf32>
      %15 = arith.subf %3, %14 : vector<8x256xf32>
      %c0_9 = arith.constant 0 : index
      %c0_10 = arith.constant 0 : index
      %16 = vector.load %arg10[%c0_9, %c0_10] : memref<8x256xf32, #tpu.memory_space<vmem>>, vector<8x256xf32>
      %17 = arith.addf %16, %15 : vector<8x256xf32>
      %c0_11 = arith.constant 0 : index
      %c0_12 = arith.constant 0 : index
      %18 = vector.load %arg10[%c0_11, %c0_12] : memref<8x256xf32, #tpu.memory_space<vmem>>, vector<8x256xf32>
      tpu.vector_store %arg10[%c0_11, %c0_12], %17 {strides = array<i32>} : memref<8x256xf32, #tpu.memory_space<vmem>>, vector<8x256xf32>,
      %c0_13 = arith.constant 0 : index
      %c0_14 = arith.constant 0 : index
      %19 = vector.load %arg11[%c0_13, %c0_14] : memref<8x256xf32, #tpu.memory_space<vmem>>, vector<8x256xf32>
      %20 = arith.mulf %15, %15 : vector<8x256xf32>
      %21 = arith.addf %19, %20 : vector<8x256xf32>
      %c0_15 = arith.constant 0 : index
      %c0_16 = arith.constant 0 : index
      %22 = vector.load %arg11[%c0_15, %c0_16] : memref<8x256xf32, #tpu.memory_space<vmem>>, vector<8x256xf32>
      tpu.vector_store %arg11[%c0_15, %c0_16], %21 {strides = array<i32>} : memref<8x256xf32, #tpu.memory_space<vmem>>, vector<8x256xf32>,
      %c1_i32_17 = arith.constant 1 : i32
      %23 = arith.cmpi eq, %arg1, %c1_i32_17 : i32
      %24 = arith.extui %23 : i1 to i32
      %c0_i32_18 = arith.constant 0 : i32
      %25 = arith.cmpi ne, %24, %c0_i32_18 : i32
      scf.if %25 {
        %c0_19 = arith.constant 0 : index
        %c0_20 = arith.constant 0 : index
        %26 = vector.load %arg10[%c0_19, %c0_20] : memref<8x256xf32, #tpu.memory_space<vmem>>, vector<8x256xf32>
        %cst_21 = arith.constant dense<0.000000e+00> : vector<8xf32>
        %27 = vector.multi_reduction <add>, %26, %cst_21 [1] : vector<8x256xf32> to vector<8xf32>
        %28 = vector.shape_cast %27 : vector<8xf32> to vector<8x1xf32>
        %cst_22 = arith.constant 0.001953125 : f32
        %29 = vector.broadcast %cst_22 : f32 to vector<8x1xf32>
        %30 = arith.mulf %28, %29 : vector<8x1xf32>
        %c0_23 = arith.constant 0 : index
        %c0_24 = arith.constant 0 : index
        %31 = vector.load %arg11[%c0_23, %c0_24] : memref<8x256xf32, #tpu.memory_space<vmem>>, vector<8x256xf32>
        %cst_25 = arith.constant dense<0.000000e+00> : vector<8xf32>
        %32 = vector.multi_reduction <add>, %31, %cst_25 [1] : vector<8x256xf32> to vector<8xf32>
        %33 = vector.shape_cast %32 : vector<8xf32> to vector<8x1xf32>
        %cst_26 = arith.constant 0.001953125 : f32
        %34 = vector.broadcast %cst_26 : f32 to vector<8x1xf32>
        %35 = arith.mulf %33, %34 : vector<8x1xf32>
        %c0_27 = arith.constant 0 : index
        %c0_28 = arith.constant 0 : index
        %36 = vector.load %arg7[%c0_27, %c0_28] : memref<8x1xf32, #tpu.memory_space<vmem>>, vector<8x1xf32>
        %37 = arith.addf %36, %30 : vector<8x1xf32>
        %c0_29 = arith.constant 0 : index
        %c0_30 = arith.constant 0 : index
        %38 = vector.load %arg8[%c0_29, %c0_30] : memref<8x1xf32, #tpu.memory_space<vmem>>, vector<8x1xf32>
        tpu.vector_store %arg8[%c0_29, %c0_30], %37 {strides = array<i32>} : memref<8x1xf32, #tpu.memory_space<vmem>>, vector<8x1xf32>,
        %39 = arith.mulf %30, %30 : vector<8x1xf32>
        %40 = arith.subf %35, %39 : vector<8x1xf32>
        %cst_31 = arith.constant 0.000000e+00 : f32
        %41 = vector.broadcast %cst_31 : f32 to vector<8x1xf32>
        %42 = arith.maximumf %40, %41 : vector<8x1xf32>
        %cst_32 = arith.constant 9.99999974E-6 : f32
        %43 = vector.broadcast %cst_32 : f32 to vector<8x1xf32>
        %44 = arith.addf %42, %43 : vector<8x1xf32>
        %45 = math.rsqrt %44 : vector<8x1xf32>
        %c0_33 = arith.constant 0 : index
        %c0_34 = arith.constant 0 : index
        %46 = vector.load %arg9[%c0_33, %c0_34] : memref<8x1xf32, #tpu.memory_space<vmem>>, vector<8x1xf32>
        tpu.vector_store %arg9[%c0_33, %c0_34], %45 {strides = array<i32>} : memref<8x1xf32, #tpu.memory_space<vmem>>, vector<8x1xf32>,
      } else {
      }
    } else {
    }
    %c1_i32 = arith.constant 1 : i32
    %7 = arith.cmpi eq, %arg0, %c1_i32 : i32
    %8 = arith.extui %7 : i1 to i32
    %c0_i32_4 = arith.constant 0 : i32
    %9 = arith.cmpi ne, %8, %c0_i32_4 : i32
    scf.if %9 {
      %c0_i32_5 = arith.constant 0 : i32
      %10 = arith.cmpi eq, %arg1, %c0_i32_5 : i32
      %11 = arith.extui %10 : i1 to i32
      %c0_i32_6 = arith.constant 0 : i32
      %12 = arith.cmpi ne, %11, %c0_i32_6 : i32
      scf.if %12 {
        %cst_23 = arith.constant 0.000000e+00 : f32
        %38 = vector.broadcast %cst_23 : f32 to vector<8x256xf32>
        %c0_24 = arith.constant 0 : index
        %c0_25 = arith.constant 0 : index
        %39 = vector.load %arg12[%c0_24, %c0_25] : memref<8x256xf32, #tpu.memory_space<vmem>>, vector<8x256xf32>
        tpu.vector_store %arg12[%c0_24, %c0_25], %38 {strides = array<i32>} : memref<8x256xf32, #tpu.memory_space<vmem>>, vector<8x256xf32>,
      } else {
      }
      %c0_7 = arith.constant 0 : index
      %c0_8 = arith.constant 0 : index
      %13 = vector.load %arg8[%c0_7, %c0_8] : memref<8x1xf32, #tpu.memory_space<vmem>>, vector<8x1xf32>
      %14 = vector.broadcast %13 : vector<8x1xf32> to vector<8x256xf32>
      %15 = arith.subf %3, %14 : vector<8x256xf32>
      %c0_9 = arith.constant 0 : index
      %c0_10 = arith.constant 0 : index
      %16 = vector.load %arg9[%c0_9, %c0_10] : memref<8x1xf32, #tpu.memory_space<vmem>>, vector<8x1xf32>
      %17 = vector.broadcast %16 : vector<8x1xf32> to vector<8x256xf32>
      %18 = arith.mulf %15, %17 : vector<8x256xf32>
      %c0_11 = arith.constant 0 : index
      %c0_12 = arith.constant 0 : index
      %19 = vector.load %arg4[%c0_11, %c0_12] : memref<8x256xbf16, #tpu.memory_space<vmem>>, vector<8x256xbf16>
      %20 = arith.extf %19 : vector<8x256xbf16> to vector<8x256xf32>
      %c0_13 = arith.constant 0 : index
      %c0_14 = arith.constant 0 : index
      %21 = vector.load %arg5[%c0_13, %c0_14] : memref<8x1xf32, #tpu.memory_space<vmem>>, vector<8x1xf32>
      %22 = vector.broadcast %21 : vector<8x1xf32> to vector<8x256xf32>
      %23 = arith.maximumf %20, %22 : vector<8x256xf32>
      %24 = arith.subf %18, %23 : vector<8x256xf32>
      %25 = arith.cmpf ogt, %18, %23 : vector<8x256xf32>
      %cst_15 = arith.constant 0.000000e+00 : f32
      %26 = vector.broadcast %cst_15 : f32 to vector<8x256xf32>
      %27 = arith.cmpf ogt, %23, %26 : vector<8x256xf32>
      %28 = arith.ori %25, %27 : vector<8x256xi1>
      %c0_16 = arith.constant 0 : index
      %c0_17 = arith.constant 0 : index
      %29 = vector.load %arg12[%c0_16, %c0_17] : memref<8x256xf32, #tpu.memory_space<vmem>>, vector<8x256xf32>
      %30 = arith.mulf %24, %24 : vector<8x256xf32>
      %cst_18 = arith.constant 0.000000e+00 : f32
      %31 = vector.broadcast %cst_18 : f32 to vector<8x256xf32>
      %32 = arith.select %28, %30, %31 : vector<8x256xi1>, vector<8x256xf32>
      %33 = arith.addf %29, %32 : vector<8x256xf32>
      %c0_19 = arith.constant 0 : index
      %c0_20 = arith.constant 0 : index
      %34 = vector.load %arg12[%c0_19, %c0_20] : memref<8x256xf32, #tpu.memory_space<vmem>>, vector<8x256xf32>
      tpu.vector_store %arg12[%c0_19, %c0_20], %33 {strides = array<i32>} : memref<8x256xf32, #tpu.memory_space<vmem>>, vector<8x256xf32>,
      %c1_i32_21 = arith.constant 1 : i32
      %35 = arith.cmpi eq, %arg1, %c1_i32_21 : i32
      %36 = arith.extui %35 : i1 to i32
      %c0_i32_22 = arith.constant 0 : i32
      %37 = arith.cmpi ne, %36, %c0_i32_22 : i32
      scf.if %37 {
        %c0_23 = arith.constant 0 : index
        %c0_24 = arith.constant 0 : index
        %38 = vector.load %arg12[%c0_23, %c0_24] : memref<8x256xf32, #tpu.memory_space<vmem>>, vector<8x256xf32>
        %39 = vector.shape_cast %38 : vector<8x256xf32> to vector<1x8x256xf32>
        %cst_25 = arith.constant dense<0.000000e+00> : vector<1xf32>
        %40 = vector.multi_reduction <add>, %39, %cst_25 [1, 2] : vector<1x8x256xf32> to vector<1xf32>
        %41 = vector.shape_cast %40 : vector<1xf32> to vector<1x1x1xf32>
        %42 = vector.extract %41[0, 0, 0] : f32 from vector<1x1x1xf32>
        %cst_26 = arith.constant 5.000000e+01 : f32
        %43 = arith.mulf %42, %cst_26 : f32
        %44 = vector.broadcast %43 : f32 to vector<1x128xf32>
        %c0_27 = arith.constant 0 : index
        %c0_28 = arith.constant 0 : index
        %45 = vector.load %arg6[%c0_27, %c0_28] : memref<1x128xf32, #tpu.memory_space<vmem>>, vector<1x128xf32>
        tpu.vector_store %arg6[%c0_27, %c0_28], %44 {strides = array<i32>} : memref<1x128xf32, #tpu.memory_space<vmem>>, vector<1x128xf32>,
      } else {
      }
    } else {
    }
    return
  }
  func.func @transform_0(%arg0: i32, %arg1: i32) -> (i32, i32) {
    %c0_i32 = arith.constant 0 : i32
    %c0_i32_0 = arith.constant 0 : i32
    return %c0_i32, %arg1 : i32, i32
  }
  func.func @transform_1(%arg0: i32, %arg1: i32) -> (i32, i32) {
    %c0_i32 = arith.constant 0 : i32
    %c0_i32_0 = arith.constant 0 : i32
    %c0_i32_1 = arith.constant 0 : i32
    return %c0_i32, %c0_i32_0 : i32, i32
  }
  func.func @transform_2(%arg0: i32, %arg1: i32) -> (i32, i32) {
    %0 = arith.muli %arg1, %arg0 : i32
    %c0_i32 = arith.constant 0 : i32
    %c0_i32_0 = arith.constant 0 : i32
    return %c0_i32, %0 : i32, i32
  }
  func.func @transform_3(%arg0: i32, %arg1: i32) -> (i32, i32) {
    %c0_i32 = arith.constant 0 : i32
    %c0_i32_0 = arith.constant 0 : i32
    %c0_i32_1 = arith.constant 0 : i32
    return %c0_i32, %c0_i32_0 : i32, i32
  }
  func.func @transform_4(%arg0: i32, %arg1: i32) -> (i32, i32) {
    %c0_i32 = arith.constant 0 : i32
    %c0_i32_0 = arith.constant 0 : i32
    %c0_i32_1 = arith.constant 0 : i32
    return %c0_i32, %c0_i32_0 : i32, i32
  }
}

</mosaic_0001>

<bundles_post_ra>
// kernel: _lambda_.3
= control target key start
LH: loop header
LB: loop body
LE: loop exit
PB: predicated region body
PF: predicated region fallthrough
CT: control target
= control target key end

     0   :  { %vm16_vm0 = vcmask 74752   ;;  %s139_s0 = inlined_call_operand.vmem [shape: f32[2,10], index: 0, kind: input, shape index: {}]   ;;  %s140_s1 = inlined_call_operand.vmem [shape: f32[2,10], index: 1, kind: input, shape index: {}]   ;;  %s141_s2 = inlined_call_operand.hbm [shape: f32[1,1], index: 2, kind: output, shape index: {}]  }
   0x1   :  { %v14_v0 = vld [vmem:[%s140_s1] sm:$0x3] }
   0x2   :  { %v12_v1 = vld [vmem:[%s139_s0] sm:$0x3]  ;;  %v15_v2 = vmul.f32 0.25, %v14_v0 }
   0x3   :  { %v13_v3 = vmul.f32 0.25, %v12_v1 }
   0x4   :  { %7 = vsyncpa [#allocation3], 0  ;;  %v30_v4 = vsel %vm16_vm0, %v15_v2, -inf  ;;  %s88_s17 = scalar_lea.hbm %s141_s2, 16 }
   0x5   :  { %31 = vmax.xlane.f32.xlu0 %v30_v4  ;;  %v17_v5 = vsel %vm16_vm0, %v13_v3, -inf  ;;  %p89_p0 = scmp.ne.s32.totalorder %s141_s2, %s88_s17  ;;  %p92_p1 = scmp.lt.u32.totalorder %s88_s17, %s141_s2 }
   0x7   :  { %p94_p2 = pnand %p92_p1, %p89_p0 }
   0x9   :  { %18 = vmax.xlane.f32.xlu0 %v17_v5 }
  0x92   :  { %v32_v6 = vpop.xlane.xlu0 %31 }
  0x93   :  { %v33_v7 = vsub.f32 %v15_v2, %v32_v6 }
  0x95   :  { %v34_v8 = vmul.f32 1.442695, %v33_v7 }
  0x96   :  { %v19_v9 = vpop.xlane.xlu0 %18 }
  0x97   :  { %78 = vpow2.f32 %v34_v8  ;;  %v20_v10 = vsub.f32 %v13_v3, %v19_v9 }
  0x99   :  { %v21_v11 = vmul.f32 1.442695, %v20_v10 }
  0x9b   :  { %80 = vpow2.f32 %v21_v11 }
  0xa1   :  { %v79_v12 = vpop.eup %78 }
  0xa2   :  { %v36_v13 = vsel %vm16_vm0, %v79_v12, 0.0 }
  0xa3   :  { %37 = vadd.xlane.f32.xlu1 %v36_v13 }
  0xa5   :  { %v81_v14 = vpop.eup %80 }
  0xa6   :  { %v23_v15 = vsel %vm16_vm0, %v81_v14, 0.0 }
  0xa7   :  { %24 = vadd.xlane.f32.xlu1 %v23_v15 }
 0x130   :  { %v38_v16 = vpop.xlane.xlu1 %37 }
 0x131   :  { %82 = vlog2.f32 %v38_v16 }
 0x134   :  { %v25_v17 = vpop.xlane.xlu1 %24 }
 0x135   :  { %84 = vlog2.f32 %v25_v17 }
 0x13b   :  { %v83_v18 = vpop.eup %82 }
 0x13c   :  { %v40_v19 = vmul.f32 0.6931472, %v83_v18 }
 0x13e   :  { %v41_v20 = vadd.f32 %v40_v19, %v32_v6 }
 0x13f   :  { %v85_v21 = vpop.eup %84 }
 0x140   :  { %v42_v22 = vsub.f32 %v15_v2, %v41_v20  ;;  %v27_v23 = vmul.f32 0.6931472, %v85_v21 }
 0x142   :  { %v43_v24 = vmul.f32 1.442695, %v42_v22  ;;  %v28_v25 = vadd.f32 %v27_v23, %v19_v9 }
 0x144   :  { %86 = vpow2.f32 %v43_v24  ;;  %v29_v26 = vsub.f32 %v13_v3, %v28_v25 }
 0x146   :  { %v45_v27 = vsub.f32 %v42_v22, %v29_v26 }
 0x14e   :  { %v87_v28 = vpop.eup %86 }
 0x14f   :  { %v46_v29 = vmul.f32 %v87_v28, %v45_v27 }
 0x151   :  { %v47_v30 = vsel %vm16_vm0, %v46_v29, 0.0 }
 0x152   :  { %48 = vadd.xlane.f32.xlu0 %v47_v30 }
 0x1df   :  { %v49_v31 = vpop.xlane.xlu0 %48 }
 0x1e0   :  { %v50_v32 = vrot.slane %v49_v31, 4 }
 0x1e2   :  { %v51_v33 = vadd.f32 %v50_v32, %v49_v31 }
 0x1e4   :  { %v52_v34 = vrot.slane %v51_v33, 2 }
 0x1e6   :  { %v53_v35 = vadd.f32 %v52_v34, %v51_v33 }
 0x1e8   :  { %v54_v36 = vrot.slane %v53_v35, 1 }
 0x1ea   :  { %v55_v37 = vadd.f32 %v54_v36, %v53_v35 }
 0x1ec   :  { %75 = vpush %v55_v37 }
 0x21d   :  { %s76_s0 = spop %75 }
 0x21e   :  { %s57_s1 = smul.f32 16.0, %s76_s0 }
 0x220   :  { %s58_s13 = smul.f32 0.5, %s57_s1 }
 0x222   :  { %s59_s14 = smul.f32 0.9, %s58_s13 }
 0x224   :  { %61 = sst [smem:[#allocation2]] %s59_s14 }
 0x225   :  { %97 = shalt.err (!%p94_p2)
}
 0x226   :  { %s100_s22 = smov [#allocation2]  }
 0x227   :  { %69 = dma.smem_to_hbm %s100_s22, 16, %s141_s2, [#allocation3]  }
 0x228   :  { %98 = dma.done.wait [#allocation3], 16  }
 0x229   :  { %99 = vsyncadd [#allocation3], 4294967280 }
 0x22a   :  { %73 = sfence }
 0x22b   :  { %74 = vsyncpa [#allocation3], 1 }

// kernel: _lambda_.4
= control target key start
LH: loop header
LB: loop body
LE: loop exit
PB: predicated region body
PF: predicated region fallthrough
CT: control target
= control target key end

     0   :  { %s624_s15 = smov 0   ;;  %s626_s16 = smov 0   ;;  %s710_s0 = inlined_call_operand.vmem [shape: bf16[4,512], index: 0, kind: input, shape index: {}]   ;;  %s711_s1 = inlined_call_operand.vmem [shape: f32[8,4], index: 1, kind: input, shape index: {}]   ;;  %s712_s2 = inlined_call_operand.vmem [shape: bf16[8,512], index: 2, kind: input, shape index: {}]   ;;  %s713_s3 = inlined_call_operand.vmem [shape: f32[8,1], index: 3, kind: input, shape index: {}]   ;;  %s714_s4 = inlined_call_operand.vmem [shape: f32[1,128], index: 4, kind: output, shape index: {}]  }
   0x1   :  { %s628_s17 = smov 0   ;;  %s630_s18 = smov 0  }
   0x2   :  { %s632_s19 = smov 0  }
   0x3 LB: > { %s23_s20 = sadd.s32 1, %s584_s17  ;;  %s26_s21 = sadd.s32 1, %s588_s18  ;;  %s592_s19 = sphi %s632_s19, %s14_s19   ;;  %s588_s18 = sphi %s630_s18, %s718_s18   ;;  %s584_s17 = sphi %s628_s17, %s717_s17   ;;  %s580_s16 = sphi %s626_s16, %s716_s16   ;;  %s576_s15 = sphi %s624_s15, %s715_s15  }
   0x4   : > { %p24_p0 = scmp.ge.s32.totalorder %s23_s20, 2  ;;  %p486_p1 = scmp.ge.s32.totalorder %s592_s19, 1 }
   0x5   : > { %p185_p2 = scmp.lt.s32.totalorder %s592_s19, 5 }
   0x6   : > { %s720_s20 = smov (%p24_p0, %s23_s20), 0  ;;  %s722_s21 = smov (!%p24_p0, %s26_s21), %s588_s18 }
   0x7   : > { %p186_p3 = pnand %p486_p1, %p185_p2  ;;  %p28_p4 = scmp.ge.s32.totalorder %s722_s21, 2 }
   0x8   : > { %s487_s22 = sshll.u32 (!%p186_p3), %s576_s15, 1  ;;  %s218_s23 = smul.u32 (!%p186_p3), %s576_s15, %s580_s16  ;;  %v594_v0 = vmov (!%p186_p3), 0   ;;  %vm243_vm0 = vcmask (!%p186_p3), 1041408   ;;  %v227_v2 = vld [vmem:[%s711_s1] sm:$0xff] (!%p186_p3)  ;;  %vm239_vm1 = vcmask (!%p186_p3), 31744  }
   0x9   : > { %s724_s21 = smov (%p28_p4, %s722_s21), 0  ;;  %189 = sbr.rel (%p186_p3) target bundleno = 1080 (0x438), region = 36 }
   0xa   : > { %p213_p5 = scmp.lt.s32.totalorder (!%p186_p3), %s487_s22, 3  ;;  %282 = vmatprep.mubr.bf16.mxu0 (!%p186_p3), %v594_v0  ;;  %s489_s24 = sshll.u32 (!%p186_p3), %s218_s23, 1  ;;  %v228_v5 = vpack.c.bf16 (!%p186_p3), %v227_v2, %v227_v2 }
   0xb   : > { %p220_p6 = scmp.lt.s32.totalorder (!%p186_p3), %s489_s24, 3  ;;  %p494_p7 = scmp.ne.s32.totalorder (!%p186_p3), %s580_s16, 0 }
  0x10   : > { %s726_s22 = smov (!%p213_p5, %s487_s22), 3  ;;  %s728_s24 = smov (!%p220_p6, %s489_s24), 3 }
  0x11   : > { %s488_s25 = sshll.u32 %s726_s22, 1  ;;  %s490_s5 = sshll.u32 %s728_s24, 2 }
  0x12   : > { %s216_s28 = scalar_lea.vmem %s710_s0, %s488_s25  ;;  %s670_s8 = scalar_lea.vmem %s712_s2, %s490_s5 }
  0x13   : > { %v491_v1 = vld.sshfl [vmem:[%s216_s28] sm:$0x33 pattern:$0x76325410]  ;;  %p495_p8 = scmp.ne.s32.totalorder (!%p494_p7), %s576_s15, 0 }
  0x14   : > { %v238_v3 = vcombine.high %v491_v1, %v491_v1  ;;  %v245_v4 = vsel %vm243_vm0, %v491_v1, 0 }
  0x16   : > { %492 = vmatprep.subr.msk.bf16.mxu0 %vm243_vm0, %v238_v3 }
  0x17   : > { %251 = vmatpush1.bf16.msra.mxu0 %v245_v4 }
  0x1a   : > { %493 = vmatmul.mubr.msk.bf16.vlgmr.msra.gmra.mrb[0].mxu0 %vm239_vm1, %v228_v5 }
  0xea   : > { %294 = sbr.rel (%p494_p7) target bundleno = 703 (0x2bf), region = 40 }
  0xed   : > { %v672_v6 = vpop.f32.mrb[0].mxu0 }
  0xee   : > { %v674_v7 = vpop.f32.mrb[1].mxu0 }
  0xef   : > { %v288_v8 = vpop.f32.mrb[2].mxu0 }
  0xf0   : > { %v289_v9 = vpop.f32.mrb[3].mxu0 }
  0xf1   : > { %298 = sbr.rel (%p495_p8) target bundleno = 388 (0x184), region = 44  ;;  %v299_v10 = vadd.f32 (!%p495_p8), %v674_v7, %v672_v6  ;;  %v595_v11 = vmov (!%p495_p8), 0.0   ;;  %vm304_vm2 = vcmask (!%p495_p8), 7168  }
  0xf2   : > { %306 = vst [vmem:[#allocation5] sm:$0xff] (!%p495_p8), %v595_v11  ;;  %307 = vst [vmem:[#allocation5 + $0x8] sm:$0xff] (!%p495_p8), %v595_v11 }
  0xf3   : > { %300 = vadd.xlane.f32.xlu0 (!%p495_p8), %v299_v10  ;;  %308 = vst [vmem:[#allocation6] sm:$0xff] (!%p495_p8), %v595_v11  ;;  %309 = vst [vmem:[#allocation6 + $0x8] sm:$0xff] (!%p495_p8), %v595_v11 }
 0x180   : > { %v301_v12 = vpop.xlane.xlu0 %300 }
 0x181   : > { %v303_v13 = vmul.f32 0.00390625, %v301_v12 }
 0x183   : > { %305 = vst.msk [vmem:[#allocation2] sm:$0xff] %vm304_vm2, %v303_v13 }
 0x184 PF: > { %v596_v15 = vmov 0   ;;  %p496_p9 = scmp.ne.s32.totalorder %s576_s15, 1 }
 0x185   : > { %549 = vset.pattern.permute.xlu0 %v596_v15  ;;  %v318_v16 = vld [vmem:[#allocation5] sm:$0xff]  ;;  %v319_v17 = vld [vmem:[#allocation5 + $0x8] sm:$0xff]  ;;  %vm350_vm3 = vcmask (!%p496_p9), 7168  }
 0x186   : > { %v324_v21 = vld [vmem:[#allocation6] sm:$0xff]  ;;  %v325_v22 = vld [vmem:[#allocation6 + $0x8] sm:$0xff] }
 0x18a   : > { %v310_v14 = vld [vmem:[#allocation2] sm:$0xff] }
 0x18b   : > { %313 = vperm.xlu0 %549, %v310_v14   ;;  %v348_v35 = vld [vmem:[#allocation2] sm:$0xff] (!%p496_p9) }
 0x20a   : > { %v314_v18 = vpop.permute.xlu0 %313 }
 0x20b   : > { %v316_v19 = vsub.f32 %v672_v6, %v314_v18  ;;  %v317_v20 = vsub.f32 %v674_v7, %v314_v18  ;;  %335 = sbr.rel (%p496_p9) target bundleno = 703 (0x2bf), region = 48 }
 0x20d   : > { %v320_v23 = vadd.f32 %v318_v16, %v316_v19  ;;  %v321_v24 = vadd.f32 %v319_v17, %v317_v20  ;;  %v326_v25 = vmul.f32 %v316_v19, %v316_v19  ;;  %v327_v26 = vmul.f32 %v317_v20, %v317_v20 }
 0x20f   : > { %322 = vst [vmem:[#allocation5] sm:$0xff] %v320_v23  ;;  %323 = vst [vmem:[#allocation5 + $0x8] sm:$0xff] %v321_v24  ;;  %v328_v27 = vadd.f32 %v326_v25, %v324_v21  ;;  %v329_v28 = vadd.f32 %v327_v26, %v325_v22 }
 0x211   : > { %330 = vst [vmem:[#allocation6] sm:$0xff] %v328_v27  ;;  %331 = vst [vmem:[#allocation6 + $0x8] sm:$0xff] %v329_v28 }
 0x216   : > { %v336_v29 = vld [vmem:[#allocation5] sm:$0xff]  ;;  %v337_v30 = vld [vmem:[#allocation5 + $0x8] sm:$0xff] }
 0x217   : > { %v338_v32 = vadd.f32 %v337_v30, %v336_v29 }
 0x218   : > { %v342_v31 = vld [vmem:[#allocation6] sm:$0xff]  ;;  %v343_v33 = vld [vmem:[#allocation6 + $0x8] sm:$0xff] }
 0x219   : > { %339 = vadd.xlane.f32.xlu0 %v338_v32  ;;  %v344_v34 = vadd.f32 %v343_v33, %v342_v31 }
 0x21d   : > { %345 = vadd.xlane.f32.xlu0 %v344_v34 }
 0x2a6   : > { %v340_v36 = vpop.xlane.xlu0 %339 }
 0x2a7   : > { %v341_v37 = vmul.f32 0.001953125, %v340_v36 }
 0x2a9   : > { %v349_v38 = vadd.f32 %v348_v35, %v341_v37  ;;  %v352_v40 = vmul.f32 %v341_v37, %v341_v37 }
 0x2aa   : > { %v346_v39 = vpop.xlane.xlu0 %345 }
 0x2ab   : > { %351 = vst.msk [vmem:[#allocation3] sm:$0xff] %vm350_vm3, %v349_v38  ;;  %v347_v41 = vmul.f32 0.001953125, %v346_v39 }
 0x2ad   : > { %v353_v42 = vsub.f32 %v347_v41, %v352_v40 }
 0x2af   : > { %v354_v43 = vmax.f32 %v353_v42, 0.0 }
 0x2b1   : > { %v355_v44 = vadd.f32 1e-05, %v354_v43 }
 0x2b3   : > { %550 = vrsqrt.f32 %v355_v44 }
 0x2bd   : > { %v551_v45 = vpop.eup %550 }
 0x2be   : > { %357 = vst.msk [vmem:[#allocation4] sm:$0xff] %vm350_vm3, %v551_v45 }
 0x2bf PF: > { %p497_p10 = scmp.ne.s32.totalorder %s580_s16, 1 }
 0x2c0   : > { %p498_p11 = scmp.ne.s32.totalorder (!%p497_p10), %s576_s15, 0 }
 0x2c1   : > { %361 = sbr.rel (%p497_p10) target bundleno = 1080 (0x438), region = 52 }
 0x2c8   : > { %365 = sbr.rel (%p498_p11) target bundleno = 719 (0x2cf), region = 56  ;;  %v597_v46 = vmov (!%p498_p11), 0.0  }
 0x2c9   : > { %366 = vst [vmem:[#allocation7] sm:$0xff] (!%p498_p11), %v597_v46  ;;  %367 = vst [vmem:[#allocation7 + $0x8] sm:$0xff] (!%p498_p11), %v597_v46 }
 0x2cf PF: > { %v368_v47 = vld [vmem:[#allocation3] sm:$0xff]  ;;  %v387_v48 = vld [vmem:[%s713_s3] sm:$0xff]  ;;  %v598_v49 = vmov 0   ;;  %v376_v50 = vld [vmem:[#allocation4] sm:$0xff]  ;;  %p499_p12 = scmp.ne.s32.totalorder %s576_s15, 1 }
 0x2d0   : > { %552 = vset.pattern.permute.xlu0 %v598_v49  ;;  %553 = vset.pattern.permute.xlu1 %v598_v49  ;;  %v384_v51 = vld [vmem:[%s670_s8] sm:$0xff]  ;;  %v403_v1 = vld [vmem:[#allocation7] sm:$0xff] }
 0x2d1   : > { %371 = vperm.xlu0 %552, %v368_v47   ;;  %390 = vperm.xlu1 %553, %v387_v48   ;;  %v385_v52 = vunpack.c.l.bf16 %v384_v51  ;;  %v386_v53 = vunpack.c.h.bf16 %v384_v51  ;;  %v404_v2 = vld [vmem:[#allocation7 + $0x8] sm:$0xff] }
 0x2d5   : > { %379 = vperm.xlu0 %552, %v376_v50  }
 0x350   : > { %v372_v54 = vpop.permute.xlu0 %371  ;;  %v391_v55 = vpop.permute.xlu1 %390 }
 0x351   : > { %v393_v56 = vmax.f32 %v385_v52, %v391_v55  ;;  %v394_v57 = vmax.f32 %v386_v53, %v391_v55  ;;  %v374_v58 = vsub.f32 %v672_v6, %v372_v54  ;;  %v375_v59 = vsub.f32 %v674_v7, %v372_v54 }
 0x353   : > { %vm399_vm4 = vcmp.gt.f32.partialorder %v393_v56, 0.0  ;;  %vm400_vm5 = vcmp.gt.f32.partialorder %v394_v57, 0.0 }
 0x354   : > { %v380_v60 = vpop.permute.xlu0 %379 }
 0x355   : > { %v382_v61 = vmul.f32 %v380_v60, %v374_v58  ;;  %v383_v62 = vmul.f32 %v380_v60, %v375_v59 }
 0x357   : > { %v395_v63 = vsub.f32 %v382_v61, %v393_v56  ;;  %v396_v0 = vsub.f32 %v383_v62, %v394_v57  ;;  %vm397_vm6 = vcmp.gt.f32.partialorder %v382_v61, %v393_v56  ;;  %vm398_vm7 = vcmp.gt.f32.partialorder %v383_v62, %v394_v57 }
 0x358   : > { %vm401_vm8 = vmor %vm397_vm6, %vm399_vm4  ;;  %416 = sbr.rel (%p499_p12) target bundleno = 1080 (0x438), region = 60 }
 0x359   : > { %v405_v3 = vmul.f32 %v395_v63, %v395_v63  ;;  %v406_v4 = vmul.f32 %v396_v0, %v396_v0  ;;  %vm402_vm9 = vmor %vm398_vm7, %vm400_vm5 }
 0x35b   : > { %v407_v5 = vsel %vm401_vm8, %v405_v3, 0.0  ;;  %v408_v8 = vsel %vm402_vm9, %v406_v4, 0.0 }
 0x35c   : > { %v409_v6 = vadd.f32 %v407_v5, %v403_v1  ;;  %v410_v9 = vadd.f32 %v408_v8, %v404_v2 }
 0x35e   : > { %411 = vst [vmem:[#allocation7] sm:$0xff] %v409_v6  ;;  %412 = vst [vmem:[#allocation7 + $0x8] sm:$0xff] %v410_v9 }
 0x365   : > { %v417_v7 = vld [vmem:[#allocation7] sm:$0xff]  ;;  %v418_v10 = vld [vmem:[#allocation7 + $0x8] sm:$0xff] }
 0x366   : > { %v419_v11 = vadd.f32 %v418_v10, %v417_v7 }
 0x368   : > { %420 = vadd.xlane.f32.xlu0 %v419_v11 }
 0x3f5   : > { %v421_v12 = vpop.xlane.xlu0 %420 }
 0x3f6   : > { %v422_v13 = vrot.slane %v421_v12, 4 }
 0x3f8   : > { %v423_v14 = vadd.f32 %v422_v13, %v421_v12 }
 0x3fa   : > { %v424_v15 = vrot.slane %v423_v14, 2 }
 0x3fc   : > { %v425_v16 = vadd.f32 %v424_v15, %v423_v14 }
 0x3fe   : > { %v426_v17 = vrot.slane %v425_v16, 1 }
 0x400   : > { %v427_v18 = vadd.f32 %v426_v17, %v425_v16 }
 0x402   : > { %502 = vpush %v427_v18 }
 0x433   : > { %s503_s11 = spop %502 }
 0x434   : > { %s429_s12 = smul.f32 50.0, %s503_s11 }
 0x436   : > { %v430_v19 = vstv %s429_s12 }
 0x437   : > { %431 = vst [vmem:[%s714_s4] sm:$0x1] %v430_v19 }
 0x438 PF: > { %s14_s19 = sadd.s32 1, %s592_s19   ;;  %s715_s15 = smov %s584_s17 }
 0x439   : > { %p11_p13 = scmp.ge.s32.totalorder %s14_s19, 6   ;;  %s716_s16 = smov %s588_s18 }
 0x43a   : > { %s717_s17 = smov %s720_s20  ;;  %s718_s18 = smov %s724_s21 }
 0x43b   :  { %13 = sbr.rel (!%p11_p13) target bundleno = 3 (0x3), region = 89 }

// kernel: _lambda_.5
= control target key start
LH: loop header
LB: loop body
LE: loop exit
PB: predicated region body
PF: predicated region fallthrough
CT: control target
= control target key end

     0   :  { %s535_s15 = smov 0   ;;  %s537_s16 = smov 0   ;;  %s584_s0 = inlined_call_operand.vmem [shape: bf16[8,128], index: 0, kind: input, shape index: {}]   ;;  %s585_s1 = inlined_call_operand.vmem [shape: f32[8,8], index: 1, kind: input, shape index: {}]   ;;  %s586_s2 = inlined_call_operand.vmem [shape: bf16[8,128], index: 2, kind: input, shape index: {}]   ;;  %s587_s3 = inlined_call_operand.vmem [shape: f32[8,1], index: 3, kind: input, shape index: {}]   ;;  %s588_s4 = inlined_call_operand.vmem [shape: f32[1,128], index: 4, kind: output, shape index: {}]  }
   0x1   :  { %s539_s17 = smov 0  }
   0x2 LB: > { %s26_s18 = sadd.s32 1, %s500_s16  ;;  %p433_p0 = scmp.ge.s32.totalorder %s504_s17, 1  ;;  %s504_s17 = sphi %s539_s17, %s14_s17   ;;  %s500_s16 = sphi %s537_s16, %s590_s16   ;;  %s496_s15 = sphi %s535_s15, %s589_s15  }
   0x3   : > { %p28_p1 = scmp.ge.s32.totalorder %s26_s18, 2  ;;  %p181_p2 = scmp.lt.s32.totalorder %s504_s17, 3 }
   0x5   : > { %s592_s18 = smov (%p28_p1, %s26_s18), 0  ;;  %p182_p3 = pnand %p433_p0, %p181_p2 }
   0x6   : > { %v219_v0 = vld [vmem:[%s584_s0] sm:$0xf] (!%p182_p3)  ;;  %vm224_vm0 = vcmask (!%p182_p3), 1043456   ;;  %v506_v2 = vmov (!%p182_p3), 0.0   ;;  %vm507_vm1 = vmmov (!%p182_p3), 0   ;;  %vm220_vm2 = vcmask (!%p182_p3), 64512  }
   0x7   : > { %185 = sbr.rel (%p182_p3) target bundleno = 1021 (0x3fd), region = 36  ;;  %v217_v1 = vld [vmem:[%s585_s1] sm:$0xff] (!%p182_p3)  ;;  %441 = vmatprep.subr.bf16.mxu0 (!%p182_p3), %v506_v2  ;;  %v226_v3 = vsel (!%p182_p3), %vm224_vm0, %v219_v0, 0  ;;  %443 = vmatprep.mubr.msk.bf16.mxu0 (!%p182_p3), %vm507_vm1, %v506_v2  ;;  %p435_p4 = scmp.ne.s32.totalorder (!%p182_p3), %s496_s15, 0 }
   0x8   : > { %v218_v4 = vpack.c.bf16 (!%p182_p3), %v217_v1, %v217_v1  ;;  %442 = vmatpush3.bf16.msra.mxu0 (!%p182_p3), %v226_v3 }
   0xb   : > { %444 = vmatmul.mubr.msk.bf16.vlgmr.msra.gmra.mrb[0].mxu0 (!%p182_p3), %vm220_vm2, %v218_v4 }
   0xe   : > { %v508_v9 = vmov (!%p435_p4), 0   ;;  %vm280_vm3 = vcmask (!%p435_p4), 7168  }
   0xf   : > { %477 = vset.pattern.permute.xlu0 (!%p435_p4), %v508_v9 }
  0xdb   : > { %271 = sbr.rel (%p435_p4) target bundleno = 671 (0x29f), region = 40 }
  0xde   : > { %v262_v5 = vpop.f32.mrb[0].mxu0 }
  0xdf   : > { %v445_v6 = vpop.f32.mrb[1].mxu0  ;;  %276 = vadd.xlane.f32.xlu0 (!%p435_p4), %v262_v5 }
  0xe0   : > { %v265_v7 = vpop.f32.mrb[2].mxu0 }
  0xe1   : > { %v446_v8 = vpop.f32.mrb[3].mxu0 }
 0x16c   : > { %v277_v10 = vpop.xlane.xlu0 %276 }
 0x16d   : > { %v279_v11 = vmul.f32 0.0078125, %v277_v10 }
 0x16f   : > { %281 = vst.msk [vmem:[#allocation2] sm:$0xff] %vm280_vm3, %v279_v11 }
 0x176   : > { %v284_v12 = vld [vmem:[#allocation2] sm:$0xff] }
 0x177   : > { %287 = vperm.xlu0 %477, %v284_v12  }
 0x1f6   : > { %v288_v13 = vpop.permute.xlu0 %287 }
 0x1f7   : > { %v290_v14 = vsub.f32 %v262_v5, %v288_v13 }
 0x1f9   : > { %302 = vadd.xlane.f32.xlu1 %v290_v14  ;;  %v295_v15 = vmul.f32 %v290_v14, %v290_v14 }
 0x1fd   : > { %306 = vadd.xlane.f32.xlu1 %v295_v15 }
 0x286   : > { %v303_v16 = vpop.xlane.xlu1 %302 }
 0x287   : > { %v304_v17 = vmul.f32 0.0078125, %v303_v16 }
 0x289   : > { %v310_v18 = vadd.f32 %v304_v17, %v284_v12  ;;  %v313_v20 = vmul.f32 %v304_v17, %v304_v17 }
 0x28a   : > { %v307_v19 = vpop.xlane.xlu1 %306 }
 0x28b   : > { %312 = vst.msk [vmem:[#allocation3] sm:$0xff] %vm280_vm3, %v310_v18  ;;  %v308_v21 = vmul.f32 0.0078125, %v307_v19 }
 0x28d   : > { %v314_v22 = vsub.f32 %v308_v21, %v313_v20 }
 0x28f   : > { %v315_v23 = vmax.f32 %v314_v22, 0.0 }
 0x291   : > { %v316_v24 = vadd.f32 1e-05, %v315_v23 }
 0x293   : > { %478 = vrsqrt.f32 %v316_v24 }
 0x29d   : > { %v479_v25 = vpop.eup %478 }
 0x29e   : > { %318 = vst.msk [vmem:[#allocation4] sm:$0xff] %vm280_vm3, %v479_v25 }
 0x29f PF: > { %p436_p5 = scmp.ne.s32.totalorder %s496_s15, 1 }
 0x2a0   : > { %v328_v26 = vld [vmem:[#allocation3] sm:$0xff] (!%p436_p5)  ;;  %v344_v27 = vld [vmem:[%s587_s3] sm:$0xff] (!%p436_p5)  ;;  %v509_v28 = vmov (!%p436_p5), 0  }
 0x2a1   : > { %322 = sbr.rel (%p436_p5) target bundleno = 1021 (0x3fd), region = 52  ;;  %480 = vset.pattern.permute.xlu0 (!%p436_p5), %v509_v28  ;;  %481 = vset.pattern.permute.xlu1 (!%p436_p5), %v509_v28  ;;  %v342_v30 = vld [vmem:[%s586_s2] sm:$0xf] (!%p436_p5) }
 0x2a2   : > { %331 = vperm.xlu0 (!%p436_p5), %480, %v328_v26   ;;  %347 = vperm.xlu1 (!%p436_p5), %481, %v344_v27   ;;  %v343_v31 = vunpack.c.l.bf16 (!%p436_p5), %v342_v30 }
 0x2a5   : > { %v335_v29 = vld [vmem:[#allocation4] sm:$0xff] (!%p436_p5) }
 0x2a6   : > { %338 = vperm.xlu0 (!%p436_p5), %480, %v335_v29  }
 0x321   : > { %v332_v32 = vpop.permute.xlu0 %331  ;;  %v348_v33 = vpop.permute.xlu1 %347 }
 0x322   : > { %v334_v34 = vsub.f32 %v262_v5, %v332_v32  ;;  %v350_v35 = vmax.f32 %v343_v31, %v348_v33 }
 0x324   : > { %vm353_vm5 = vcmp.gt.f32.partialorder %v350_v35, 0.0 }
 0x325   : > { %v339_v36 = vpop.permute.xlu0 %338 }
 0x326   : > { %v341_v37 = vmul.f32 %v339_v36, %v334_v34 }
 0x328   : > { %v351_v38 = vsub.f32 %v341_v37, %v350_v35  ;;  %vm352_vm4 = vcmp.gt.f32.partialorder %v341_v37, %v350_v35 }
 0x329   : > { %vm354_vm6 = vmor %vm352_vm4, %vm353_vm5 }
 0x32a   : > { %v356_v39 = vmul.f32 %v351_v38, %v351_v38 }
 0x32c   : > { %v357_v40 = vsel %vm354_vm6, %v356_v39, 0.0 }
 0x32d   : > { %364 = vadd.xlane.f32.xlu1 %v357_v40 }
 0x3ba   : > { %v365_v41 = vpop.xlane.xlu1 %364 }
 0x3bb   : > { %v366_v42 = vrot.slane %v365_v41, 4 }
 0x3bd   : > { %v367_v43 = vadd.f32 %v366_v42, %v365_v41 }
 0x3bf   : > { %v368_v44 = vrot.slane %v367_v43, 2 }
 0x3c1   : > { %v369_v45 = vadd.f32 %v368_v44, %v367_v43 }
 0x3c3   : > { %v370_v46 = vrot.slane %v369_v45, 1 }
 0x3c5   : > { %v371_v47 = vadd.f32 %v370_v46, %v369_v45 }
 0x3c7   : > { %447 = vpush %v371_v47 }
 0x3f8   : > { %s448_s27 = spop %447 }
 0x3f9   : > { %s373_s28 = smul.f32 100.0, %s448_s27 }
 0x3fb   : > { %v374_v48 = vstv %s373_s28 }
 0x3fc   : > { %375 = vst [vmem:[%s588_s4] sm:$0x1] %v374_v48 }
 0x3fd PF: > { %s14_s17 = sadd.s32 1, %s504_s17   ;;  %s589_s15 = smov %s500_s16 }
 0x3fe   : > { %p11_p6 = scmp.ge.s32.totalorder %s14_s17, 4   ;;  %s590_s16 = smov %s592_s18 }
 0x400   :  { %13 = sbr.rel (!%p11_p6) target bundleno = 2 (0x2), region = 89 }

</bundles_post_ra>
